<compile_context>
chip_gen: v7x
topology: tpu7x:2x2x1
jax: 0.10.0
libtpu: 0.0.40
codegen_flags: <defaults>
</compile_context>

<pallas_src>
import jax
import jax.numpy as jnp
import numpy as np
from jax.experimental import pallas as pl
from jax.experimental.pallas import tpu as pltpu


def _dense_arch_kernel(x_ref, w1_ref, b1_ref, w2_ref, b2_ref, out_ref):
    """Fused 2-layer MLP with ReLU activations.

    x_ref   : [TB, F_pad]  f32 input tile (one batch tile)
    w1_ref  : [F_pad, H_pad] f32 first-layer weight (x @ W1 layout)
    b1_ref  : [1, H_pad]   f32 first-layer bias
    w2_ref  : [H_pad, D_pad] f32 second-layer weight
    b2_ref  : [1, D_pad]   f32 second-layer bias
    out_ref : [TB, D_pad]  f32 output tile
    """
    x = x_ref[...]
    # Layer 1: MXU matmul + bias + ReLU. Hidden activation stays in registers/VMEM.
    h = jnp.dot(x, w1_ref[...], preferred_element_type=jnp.float32) + b1_ref[...]
    h = jnp.maximum(h, 0.0)
    # Layer 2: MXU matmul + bias + ReLU.
    o = jnp.dot(h, w2_ref[...], preferred_element_type=jnp.float32) + b2_ref[...]
    out_ref[...] = jnp.maximum(o, 0.0)


def _round_up(v, m):
    return ((v + m - 1) // m) * m


def dense_arch_forward(x, w1, b1, w2, b2, *, block_b=128):
    """DenseArch forward: relu(relu(x @ w1 + b1) @ w2 + b2).

    x  : [B, F]   dense features
    w1 : [F, H]   first Linear weight (already in x@W layout)
    b1 : [H]
    w2 : [H, D]   second Linear weight
    b2 : [D]
    returns [B, D]
    """
    B, F = x.shape
    H = w1.shape[1]
    D = w2.shape[1]

    # Lane-dense padding: feature dims -> multiple of 128, batch tile -> multiple of 8.
    F_pad = _round_up(F, 128)
    H_pad = _round_up(H, 128)
    D_pad = _round_up(D, 128)
    TB = min(block_b, _round_up(B, 8))
    B_pad = _round_up(B, TB)

    f32 = jnp.float32
    x_p = jnp.zeros((B_pad, F_pad), f32).at[:B, :F].set(x.astype(f32))
    w1_p = jnp.zeros((F_pad, H_pad), f32).at[:F, :H].set(w1.astype(f32))
    b1_p = jnp.zeros((1, H_pad), f32).at[0, :H].set(b1.astype(f32))
    w2_p = jnp.zeros((H_pad, D_pad), f32).at[:H, :D].set(w2.astype(f32))
    b2_p = jnp.zeros((1, D_pad), f32).at[0, :D].set(b2.astype(f32))

    grid = (B_pad // TB,)
    out = pl.pallas_call(
        _dense_arch_kernel,
        out_shape=jax.ShapeDtypeStruct((B_pad, D_pad), f32),
        grid_spec=pltpu.PrefetchScalarGridSpec(
            num_scalar_prefetch=0,
            grid=grid,
            in_specs=[
                pl.BlockSpec((TB, F_pad), lambda i: (i, 0)),      # batch tile of x
                pl.BlockSpec((F_pad, H_pad), lambda i: (0, 0)),   # W1 (resident)
                pl.BlockSpec((1, H_pad), lambda i: (0, 0)),       # b1
                pl.BlockSpec((H_pad, D_pad), lambda i: (0, 0)),   # W2 (resident)
                pl.BlockSpec((1, D_pad), lambda i: (0, 0)),       # b2
            ],
            out_specs=pl.BlockSpec((TB, D_pad), lambda i: (i, 0)),
        ),
        compiler_params=pltpu.CompilerParams(
            dimension_semantics=("parallel",),   # batch tiles are independent
        ),
    )(x_p, w1_p, b1_p, w2_p, b2_p)

    # Strip the lane/sublane padding.
    return out[:B, :D]


if __name__ == "__main__":
    # Shapes from the DenseArch docstring example:
    #   B = 20, in_features = 10, hidden_layer_size = 10, embedding_dim = 3
    B = 20
    in_features = 10
    hidden_layer_size = 10
    embedding_dim = 3

    key = jax.random.PRNGKey(0)
    k_x, k_w1, k_b1, k_w2, k_b2 = jax.random.split(key, 5)

    x = jax.random.uniform(k_x, (B, in_features), dtype=jnp.float32)
    # Weights in x @ W layout ([in, out]); equivalent to nn.Linear(W.T).
    w1 = jax.random.normal(k_w1, (in_features, hidden_layer_size), jnp.float32) * 0.1
    b1 = jax.random.normal(k_b1, (hidden_layer_size,), jnp.float32) * 0.1
    w2 = jax.random.normal(k_w2, (hidden_layer_size, embedding_dim), jnp.float32) * 0.1
    b2 = jax.random.normal(k_b2, (embedding_dim,), jnp.float32) * 0.1

    out = dense_arch_forward(x, w1, b1, w2, b2)
    out = jax.block_until_ready(out)

    # Pure-JAX reference: relu(relu(x @ w1 + b1) @ w2 + b2)
    h_ref = jnp.maximum(x @ w1 + b1, 0.0)
    ref = jnp.maximum(h_ref @ w2 + b2, 0.0)

    assert out.shape == (B, embedding_dim)
    np.testing.assert_allclose(np.asarray(out), np.asarray(ref),
                               rtol=1e-5, atol=1e-5)

    print("KERNEL_OK")
</pallas_src>

<mosaic_0001>
module attributes {stable_mosaic.version = 11 : i64} {
  func.func @_dense_arch_kernel(%arg0: i32, %arg1: memref<24x128xf32, #tpu.memory_space<vmem>>, %arg2: memref<128x128xf32, #tpu.memory_space<vmem>>, %arg3: memref<1x128xf32, #tpu.memory_space<vmem>>, %arg4: memref<128x128xf32, #tpu.memory_space<vmem>>, %arg5: memref<1x128xf32, #tpu.memory_space<vmem>>, %arg6: memref<24x128xf32, #tpu.memory_space<vmem>>) attributes {dimension_semantics = [#tpu.dimension_semantics<parallel>], iteration_bounds = array<i64: 1>, scalar_prefetch = 0 : i64, scratch_operands = 0 : i64, tpu.core_type = #tpu.core_type<tc>, window_params = [{transform_indices = @transform_0, window_bounds = array<i64: 24, 128>}, {pipeline_mode = #tpu.pipeline_mode<synchronous>, transform_indices = @transform_1, window_bounds = array<i64: 128, 128>}, {pipeline_mode = #tpu.pipeline_mode<synchronous>, transform_indices = @transform_2, window_bounds = array<i64: 1, 128>}, {pipeline_mode = #tpu.pipeline_mode<synchronous>, transform_indices = @transform_3, window_bounds = array<i64: 128, 128>}, {pipeline_mode = #tpu.pipeline_mode<synchronous>, transform_indices = @transform_4, window_bounds = array<i64: 1, 128>}, {transform_indices = @transform_5, window_bounds = array<i64: 24, 128>}]} {
    %c0 = arith.constant 0 : index
    %c0_0 = arith.constant 0 : index
    %0 = vector.load %arg1[%c0, %c0_0] : memref<24x128xf32, #tpu.memory_space<vmem>>, vector<24x128xf32>
    %c0_1 = arith.constant 0 : index
    %c0_2 = arith.constant 0 : index
    %1 = vector.load %arg2[%c0_1, %c0_2] : memref<128x128xf32, #tpu.memory_space<vmem>>, vector<128x128xf32>
    %cst = arith.constant dense<0.000000e+00> : vector<24x128xf32>
    %2 = tpu.matmul %0, %1, %cst {dimension_numbers = #tpu.dot_dimension_numbers<[1], [0], [0], [1], [0, 0, 1, 1], [], []>} : vector<24x128xf32>, vector<128x128xf32>, vector<24x128xf32> -> vector<24x128xf32>
    %c0_3 = arith.constant 0 : index
    %c0_4 = arith.constant 0 : index
    %3 = vector.load %arg3[%c0_3, %c0_4] : memref<1x128xf32, #tpu.memory_space<vmem>>, vector<1x128xf32>
    %4 = vector.broadcast %3 : vector<1x128xf32> to vector<24x128xf32>
    %5 = arith.addf %2, %4 : vector<24x128xf32>
    %cst_5 = arith.constant 0.000000e+00 : f32
    %6 = vector.broadcast %cst_5 : f32 to vector<24x128xf32>
    %7 = arith.maximumf %5, %6 : vector<24x128xf32>
    %c0_6 = arith.constant 0 : index
    %c0_7 = arith.constant 0 : index
    %8 = vector.load %arg4[%c0_6, %c0_7] : memref<128x128xf32, #tpu.memory_space<vmem>>, vector<128x128xf32>
    %cst_8 = arith.constant dense<0.000000e+00> : vector<24x128xf32>
    %9 = tpu.matmul %7, %8, %cst_8 {dimension_numbers = #tpu.dot_dimension_numbers<[1], [0], [0], [1], [0, 0, 1, 1], [], []>} : vector<24x128xf32>, vector<128x128xf32>, vector<24x128xf32> -> vector<24x128xf32>
    %c0_9 = arith.constant 0 : index
    %c0_10 = arith.constant 0 : index
    %10 = vector.load %arg5[%c0_9, %c0_10] : memref<1x128xf32, #tpu.memory_space<vmem>>, vector<1x128xf32>
    %11 = vector.broadcast %10 : vector<1x128xf32> to vector<24x128xf32>
    %12 = arith.addf %9, %11 : vector<24x128xf32>
    %cst_11 = arith.constant 0.000000e+00 : f32
    %13 = vector.broadcast %cst_11 : f32 to vector<24x128xf32>
    %14 = arith.maximumf %12, %13 : vector<24x128xf32>
    %c0_12 = arith.constant 0 : index
    %c0_13 = arith.constant 0 : index
    %15 = vector.load %arg6[%c0_12, %c0_13] : memref<24x128xf32, #tpu.memory_space<vmem>>, vector<24x128xf32>
    tpu.vector_store %arg6[%c0_12, %c0_13], %14 {strides = array<i32>} : memref<24x128xf32, #tpu.memory_space<vmem>>, vector<24x128xf32>,
    return
  }
  func.func @transform_0(%arg0: i32) -> (i32, i32) {
    %c0_i32 = arith.constant 0 : i32
    %c0_i32_0 = arith.constant 0 : i32
    return %arg0, %c0_i32 : i32, i32
  }
  func.func @transform_1(%arg0: i32) -> (i32, i32) {
    %c0_i32 = arith.constant 0 : i32
    %c0_i32_0 = arith.constant 0 : i32
    %c0_i32_1 = arith.constant 0 : i32
    return %c0_i32, %c0_i32_0 : i32, i32
  }
  func.func @transform_2(%arg0: i32) -> (i32, i32) {
    %c0_i32 = arith.constant 0 : i32
    %c0_i32_0 = arith.constant 0 : i32
    %c0_i32_1 = arith.constant 0 : i32
    return %c0_i32, %c0_i32_0 : i32, i32
  }
  func.func @transform_3(%arg0: i32) -> (i32, i32) {
    %c0_i32 = arith.constant 0 : i32
    %c0_i32_0 = arith.constant 0 : i32
    %c0_i32_1 = arith.constant 0 : i32
    return %c0_i32, %c0_i32_0 : i32, i32
  }
  func.func @transform_4(%arg0: i32) -> (i32, i32) {
    %c0_i32 = arith.constant 0 : i32
    %c0_i32_0 = arith.constant 0 : i32
    %c0_i32_1 = arith.constant 0 : i32
    return %c0_i32, %c0_i32_0 : i32, i32
  }
  func.func @transform_5(%arg0: i32) -> (i32, i32) {
    %c0_i32 = arith.constant 0 : i32
    %c0_i32_0 = arith.constant 0 : i32
    return %arg0, %c0_i32 : i32, i32
  }
}

</mosaic_0001>

<bundles_post_ra>
// kernel: tpu_custom_call.1
= control target key start
LH: loop header
LB: loop body
LE: loop exit
PB: predicated region body
PF: predicated region fallthrough
CT: control target
= control target key end

     0   :  { %10 = vsyncpa [#allocation3], 0  ;;  %s711_s0 = inlined_call_operand.hbm [shape: f32[24,128], index: 0, kind: input, shape index: {}]   ;;  %s712_s1 = inlined_call_operand.hbm [shape: f32[128,128], index: 1, kind: input, shape index: {}]   ;;  %s713_s2 = inlined_call_operand.vmem [shape: f32[1,128], index: 2, kind: input, shape index: {}]   ;;  %s714_s3 = inlined_call_operand.hbm [shape: f32[128,128], index: 3, kind: input, shape index: {}]   ;;  %s715_s4 = inlined_call_operand.vmem [shape: f32[1,128], index: 4, kind: input, shape index: {}]   ;;  %s716_s5 = inlined_call_operand.hbm [shape: f32[24,128], index: 5, kind: output, shape index: {}]  }
   0x1   :  { %11 = vsyncpa [#allocation6], 0 }
   0x2   :  { %12 = vsyncpa [#allocation4], 0  ;;  %s571_s18 = smov [#allocation5]   ;;  %s572_s20 = smov [#allocation2]  }
   0x3   :  { %s30_s19 = sshll.u32 %s571_s18, 4  ;;  %s18_s21 = sshll.u32 %s572_s20, 4  ;;  %s31_s19 = int_to_ptr.vmem [resolvable:$true] %s30_s19  ;;  %s610_s21 = int_to_ptr.vmem [resolvable:$true] %s18_s21 }
   0x4   :  { %s477_s24 = scalar_lea.hbm %s712_s1, 2048 }
   0x5   :  { %p478_p0 = scmp.ne.s32.totalorder %s712_s1, %s477_s24  ;;  %p481_p1 = scmp.lt.u32.totalorder %s477_s24, %s712_s1 }
   0x7   :  { %p483_p2 = pnand %p481_p1, %p478_p0 }
   0x9   :  { %486 = shalt.err (!%p483_p2)
}
   0xa   :  { %s487_s29 = scalar_lea.vmem %s31_s19, 2048  ;;  %p492_p4 = scmp.lt.s32.totalorder %s31_s19, %s31_s19 }
   0xb   :  { %p488_p3 = scmp.ne.s32.totalorder %s31_s19, %s487_s29  ;;  %p493_p5 = scmp.lt.s32.totalorder %s487_s29, %s487_s29 }
   0xd   :  { %p494_p6 = por %p493_p5, %p492_p4 }
   0xf   :  { %p495_p7 = pnand %p494_p6, %p488_p3 }
  0x11   :  { %498 = shalt.err (!%p495_p7)
}
  0x12   :  { %s573_s30 = smov 128   ;;  %s574_s6 = smov 8  }
  0x13   :  { %36 = dma.hbm_to_vmem [thread:$0]  %s712_s1, 2048, %s31_s19, [#allocation6], %s573_s30, %s573_s30, %s574_s6  }
  0x14   :  { %s499_s11 = scalar_lea.hbm %s711_s0, 384 }
  0x15   :  { %p500_p8 = scmp.ne.s32.totalorder %s711_s0, %s499_s11  ;;  %p503_p9 = scmp.lt.u32.totalorder %s499_s11, %s711_s0 }
  0x17   :  { %p505_p10 = pnand %p503_p9, %p500_p8 }
  0x19   :  { %508 = shalt.err (!%p505_p10)
}
  0x1a   :  { %s509_s16 = scalar_lea.vmem %s610_s21, 384  ;;  %p514_p12 = scmp.lt.s32.totalorder %s610_s21, %s610_s21 }
  0x1b   :  { %p510_p11 = scmp.ne.s32.totalorder %s610_s21, %s509_s16  ;;  %p515_p13 = scmp.lt.s32.totalorder %s509_s16, %s509_s16 }
  0x1d   :  { %p516_p0 = por %p515_p13, %p514_p12 }
  0x1f   :  { %p517_p1 = pnand %p516_p0, %p510_p11 }
  0x21   :  { %520 = shalt.err (!%p517_p1)
}
  0x22   :  { %24 = dma.hbm_to_vmem [thread:$0]  %s711_s0, 384, %s610_s21, [#allocation3], %s573_s30, %s573_s30, %s574_s6  }
  0x23   :  { %s575_s18 = smov [#allocation7]   ;;  %s521_s23 = scalar_lea.hbm %s714_s3, 2048 }
  0x24   :  { %s44_s19 = sshll.u32 %s575_s18, 4  ;;  %p522_p2 = scmp.ne.s32.totalorder %s714_s3, %s521_s23  ;;  %s45_s19 = int_to_ptr.vmem [resolvable:$true] %s44_s19 }
  0x25   :  { %p525_p3 = scmp.lt.u32.totalorder %s521_s23, %s714_s3 }
  0x27   :  { %p527_p4 = pnand %p525_p3, %p522_p2 }
  0x29   :  { %530 = shalt.err (!%p527_p4)
}
  0x2a   :  { %s531_s28 = scalar_lea.vmem %s45_s19, 2048  ;;  %p536_p6 = scmp.lt.s32.totalorder %s45_s19, %s45_s19 }
  0x2b   :  { %p532_p5 = scmp.ne.s32.totalorder %s45_s19, %s531_s28  ;;  %p537_p7 = scmp.lt.s32.totalorder %s531_s28, %s531_s28 }
  0x2d   :  { %p538_p8 = por %p537_p7, %p536_p6 }
  0x2f   :  { %p539_p9 = pnand %p538_p8, %p532_p5 }
  0x31   :  { %542 = shalt.err (!%p539_p9)
}
  0x32   :  { %50 = dma.hbm_to_vmem [thread:$0]  %s714_s3, 2048, %s45_s19, [#allocation6], %s573_s30, %s573_s30, %s574_s6  }
  0x33   :  { %565 = dma.done.wait [#allocation3], 384  }
  0x34   :  { %566 = vsyncadd [#allocation3], 4294966912 }
  0x35   :  { %567 = dma.done.wait [#allocation6], 4096  }
  0x36   :  { %568 = vsyncadd [#allocation6], 4294963200  ;;  %v576_v0 = vmov 0.0|0.0   ;;  %vm577_vm0 = vmmov 0   ;;  %v578_v1 = vmov 0.0   ;;  %v65_v2 = vld [vmem:[#allocation5] sm:$0xff] }
  0x37   :  { %420 = vmatprep.subr.bf16.mxu0 %v576_v0  ;;  %370 = vmatprep.mubr.msk.f32.mxu0 %vm577_vm0, %v578_v1  ;;  %v66_v3 = vld [vmem:[#allocation5 + $0x8] sm:$0xff]  ;;  %v67_v4 = vld [vmem:[#allocation5 + $0x10] sm:$0xff]  ;;  %v68_v6 = vld [vmem:[#allocation5 + $0x18] sm:$0xff]  ;;  %s579_s8 = smov [#allocation8]  }
  0x38   :  { %444 = vmatprep.subr.bf16.mxu1 %v576_v0  ;;  %411 = vmatprep.mubr.msk.f32.mxu1 %vm577_vm0, %v578_v1  ;;  %v421_v5 = vpack.c.bf16 %v66_v3, %v65_v2  ;;  %v424_v7 = vpack.c.bf16 %v68_v6, %v67_v4  ;;  %v69_v8 = vld [vmem:[#allocation5 + $0x20] sm:$0xff]  ;;  %v70_v9 = vld [vmem:[#allocation5 + $0x28] sm:$0xff]  ;;  %v173_v14 = vld [vmem:[#allocation7 + $0x10] sm:$0xff]  ;;  %s285_s9 = sshll.u32 %s579_s8, 4  ;;  %s286_s9 = int_to_ptr.vmem [resolvable:$true] %s285_s9 }
  0x39   :  { %v171_v10 = vld [vmem:[#allocation7] sm:$0xff]  ;;  %v172_v11 = vld [vmem:[#allocation7 + $0x8] sm:$0xff]  ;;  %v427_v12 = vpack.c.bf16 %v70_v9, %v69_v8  ;;  %v174_v15 = vld [vmem:[#allocation7 + $0x18] sm:$0xff]  ;;  %s543_s10 = scalar_lea.vmem %s286_s9, 384  ;;  %p548_p11 = scmp.lt.s32.totalorder %s286_s9, %s286_s9 }
  0x3a   :  { %422 = vmatpush3.bf16.msra.mxu0 %v421_v5  ;;  %v445_v13 = vpack.c.bf16 %v172_v11, %v171_v10  ;;  %v71_v16 = vld [vmem:[#allocation5 + $0x30] sm:$0xff]  ;;  %v72_v17 = vld [vmem:[#allocation5 + $0x38] sm:$0xff]  ;;  %v448_v18 = vpack.c.bf16 %v174_v15, %v173_v14  ;;  %v175_v19 = vld [vmem:[#allocation7 + $0x20] sm:$0xff]  ;;  %p544_p10 = scmp.ne.s32.totalorder %s286_s9, %s543_s10  ;;  %p549_p12 = scmp.lt.s32.totalorder %s543_s10, %s543_s10 }
  0x3b   :  { %423 = vmatprep.subr.bf16.mxu0 %v576_v0  ;;  %v176_v20 = vld [vmem:[#allocation7 + $0x28] sm:$0xff]  ;;  %v430_v21 = vpack.c.bf16 %v72_v17, %v71_v16  ;;  %v73_v22 = vld [vmem:[#allocation5 + $0x40] sm:$0xff]  ;;  %v177_v25 = vld [vmem:[#allocation7 + $0x30] sm:$0xff] }
  0x3c   :  { %446 = vmatpush3.bf16.msra.mxu1 %v445_v13  ;;  %v74_v23 = vld [vmem:[#allocation5 + $0x48] sm:$0xff]  ;;  %v451_v24 = vpack.c.bf16 %v176_v20, %v175_v19  ;;  %v178_v26 = vld [vmem:[#allocation7 + $0x38] sm:$0xff]  ;;  %v75_v28 = vld [vmem:[#allocation5 + $0x50] sm:$0xff]  ;;  %p550_p13 = por %p549_p12, %p548_p11 }
  0x3d   :  { %447 = vmatprep.subr.bf16.mxu1 %v576_v0  ;;  %v433_v27 = vpack.c.bf16 %v74_v23, %v73_v22  ;;  %v76_v29 = vld [vmem:[#allocation5 + $0x58] sm:$0xff]  ;;  %v454_v30 = vpack.c.bf16 %v178_v26, %v177_v25  ;;  %v179_v31 = vld [vmem:[#allocation7 + $0x40] sm:$0xff]  ;;  %v180_v32 = vld [vmem:[#allocation7 + $0x48] sm:$0xff] }
  0x3e   :  { %425 = vmatpush3.bf16.msra.mxu0 %v424_v7  ;;  %v436_v33 = vpack.c.bf16 %v76_v29, %v75_v28  ;;  %v77_v34 = vld [vmem:[#allocation5 + $0x60] sm:$0xff]  ;;  %v78_v35 = vld [vmem:[#allocation5 + $0x68] sm:$0xff]  ;;  %v457_v36 = vpack.c.bf16 %v180_v32, %v179_v31  ;;  %v181_v37 = vld [vmem:[#allocation7 + $0x50] sm:$0xff]  ;;  %p551_p0 = pnand %p550_p13, %p544_p10 }
  0x3f   :  { %426 = vmatprep.subr.bf16.mxu0 %v576_v0  ;;  %v182_v38 = vld [vmem:[#allocation7 + $0x58] sm:$0xff]  ;;  %v439_v39 = vpack.c.bf16 %v78_v35, %v77_v34  ;;  %v79_v40 = vld [vmem:[#allocation5 + $0x70] sm:$0xff]  ;;  %v183_v43 = vld [vmem:[#allocation7 + $0x60] sm:$0xff] }
  0x40   :  { %449 = vmatpush3.bf16.msra.mxu1 %v448_v18  ;;  %v80_v41 = vld [vmem:[#allocation5 + $0x78] sm:$0xff]  ;;  %v460_v42 = vpack.c.bf16 %v182_v38, %v181_v37  ;;  %v184_v44 = vld [vmem:[#allocation7 + $0x68] sm:$0xff]  ;;  %v63_v48 = vld [vmem:[#allocation2 + $0x8] sm:$0xff] }
  0x41   :  { %450 = vmatprep.subr.bf16.mxu1 %v576_v0  ;;  %v442_v45 = vpack.c.bf16 %v80_v41, %v79_v40  ;;  %v463_v46 = vpack.c.bf16 %v184_v44, %v183_v43  ;;  %v62_v47 = vld [vmem:[#allocation2] sm:$0xff]  ;;  %v64_v49 = vld [vmem:[#allocation2 + $0x10] sm:$0xff]  ;;  %v185_v50 = vld [vmem:[#allocation7 + $0x70] sm:$0xff] }
  0x42   :  { %428 = vmatpush3.bf16.msra.mxu0 %v427_v12  ;;  %v186_v51 = vld [vmem:[#allocation7 + $0x78] sm:$0xff]  ;;  %v298_v53 = vld [vmem:[%s713_s2] ss:$0 sm:$0xff] }
  0x43   :  { %429 = vmatprep.subr.bf16.mxu0 %v576_v0  ;;  %v466_v52 = vpack.c.bf16 %v186_v51, %v185_v50  ;;  %v299_v3 = vld [vmem:[%s715_s4] ss:$0 sm:$0xff] }
  0x44   :  { %452 = vmatpush3.bf16.msra.mxu1 %v451_v24 }
  0x45   :  { %453 = vmatprep.subr.bf16.mxu1 %v576_v0 }
  0x46   :  { %431 = vmatpush3.bf16.msra.mxu0 %v430_v21 }
  0x47   :  { %432 = vmatprep.subr.bf16.mxu0 %v576_v0 }
  0x48   :  { %455 = vmatpush3.bf16.msra.mxu1 %v454_v30 }
  0x49   :  { %456 = vmatprep.subr.bf16.mxu1 %v576_v0 }
  0x4a   :  { %434 = vmatpush3.bf16.msra.mxu0 %v433_v27 }
  0x4b   :  { %435 = vmatprep.subr.bf16.mxu0 %v576_v0 }
  0x4c   :  { %458 = vmatpush3.bf16.msra.mxu1 %v457_v36 }
  0x4d   :  { %459 = vmatprep.subr.bf16.mxu1 %v576_v0 }
  0x4e   :  { %437 = vmatpush3.bf16.msra.mxu0 %v436_v33 }
  0x4f   :  { %438 = vmatprep.subr.bf16.mxu0 %v576_v0 }
  0x50   :  { %461 = vmatpush3.bf16.msra.mxu1 %v460_v42 }
  0x51   :  { %462 = vmatprep.subr.bf16.mxu1 %v576_v0 }
  0x52   :  { %440 = vmatpush3.bf16.msra.mxu0 %v439_v39 }
  0x53   :  { %441 = vmatprep.subr.bf16.mxu0 %v576_v0 }
  0x54   :  { %464 = vmatpush3.bf16.msra.mxu1 %v463_v46 }
  0x55   :  { %465 = vmatprep.subr.bf16.mxu1 %v576_v0 }
  0x56   :  { %443 = vmatpush3.bf16.msra.mxu0 %v442_v45 }
  0x58   :  { %467 = vmatpush3.bf16.msra.mxu1 %v466_v52 }
  0x59   :  { %371 = vmatmul.mubr.f32.vlgmr.msra.gmra.mrb[0].mxu0 %v62_v47 }
  0x5a   :  { %373 = vmatprep.mubr.msk.f32.mxu0 %vm577_vm0, %v578_v1 }
  0x5d   :  { %374 = vmatmul.mubr.f32.gmra.mrb[2].mxu0 %v63_v48 }
  0x5e   :  { %376 = vmatprep.mubr.msk.f32.mxu0 %vm577_vm0, %v578_v1 }
  0x61   :  { %377 = vmatmul.mubr.f32.gmra.mrb[4].mxu0 %v64_v49 }
 0x12c   :  { %v154_v54 = vpop.f32.mrb[0].mxu0 }
 0x12d   :  { %v155_v55 = vadd.f32 %v298_v53, %v154_v54  ;;  %v372_v56 = vpop.f32.mrb[1].mxu0 }
 0x12f   :  { %v168_v57 = vmax.f32 %v155_v55, 0.0 }
 0x130   :  { %v159_v58 = vpop.f32.mrb[2].mxu0 }
 0x131   :  { %v160_v59 = vadd.f32 %v298_v53, %v159_v58  ;;  %v375_v60 = vpop.f32.mrb[3].mxu0  ;;  %412 = vmatmul.mubr.f32.vlgmr.msra.gmra.mrb[0].mxu1 %v168_v57 }
 0x132   :  { %414 = vmatprep.mubr.msk.f32.mxu1 %vm577_vm0, %v578_v1 }
 0x133   :  { %v169_v61 = vmax.f32 %v160_v59, 0.0 }
 0x134   :  { %v164_v62 = vpop.f32.mrb[4].mxu0 }
 0x135   :  { %v165_v63 = vadd.f32 %v298_v53, %v164_v62  ;;  %v378_v0 = vpop.f32.mrb[5].mxu0  ;;  %415 = vmatmul.mubr.f32.gmra.mrb[2].mxu1 %v169_v61 }
 0x136   :  { %417 = vmatprep.mubr.msk.f32.mxu1 %vm577_vm0, %v578_v1 }
 0x137   :  { %v170_v2 = vmax.f32 %v165_v63, 0.0 }
 0x139   :  { %418 = vmatmul.mubr.f32.gmra.mrb[4].mxu1 %v170_v2 }
 0x204   :  { %v260_v4 = vpop.f32.mrb[0].mxu1 }
 0x205   :  { %v261_v5 = vadd.f32 %v299_v3, %v260_v4  ;;  %v413_v6 = vpop.f32.mrb[1].mxu1 }
 0x207   :  { %v274_v7 = vmax.f32 %v261_v5, 0.0 }
 0x208   :  { %v265_v8 = vpop.f32.mrb[2].mxu1 }
 0x209   :  { %277 = vst [vmem:[#allocation8] sm:$0xff] %v274_v7  ;;  %v266_v9 = vadd.f32 %v299_v3, %v265_v8  ;;  %v416_v10 = vpop.f32.mrb[3].mxu1 }
 0x20b   :  { %v275_v11 = vmax.f32 %v266_v9, 0.0 }
 0x20c   :  { %v270_v12 = vpop.f32.mrb[4].mxu1 }
 0x20d   :  { %278 = vst [vmem:[#allocation8 + $0x8] sm:$0xff] %v275_v11  ;;  %v271_v1 = vadd.f32 %v299_v3, %v270_v12  ;;  %v419_v13 = vpop.f32.mrb[5].mxu1 }
 0x20f   :  { %v276_v14 = vmax.f32 %v271_v1, 0.0 }
 0x211   :  { %279 = vst [vmem:[#allocation8 + $0x10] sm:$0xff] %v276_v14 }
 0x212   :  { %554 = shalt.err (!%p551_p0)
}
 0x213   :  { %s555_s12 = scalar_lea.hbm %s716_s5, 384 }
 0x214   :  { %p556_p1 = scmp.ne.s32.totalorder %s716_s5, %s555_s12  ;;  %p559_p2 = scmp.lt.u32.totalorder %s555_s12, %s716_s5 }
 0x216   :  { %p561_p3 = pnand %p559_p2, %p556_p1 }
 0x218   :  { %564 = shalt.err (!%p561_p3)
}
 0x219   :  { %291 = dma.vmem_to_hbm [thread:$0]  %s286_s9, 384, %s716_s5, [#allocation4], %s573_s30, %s573_s30, %s574_s6  }
 0x21a   :  { %569 = dma.done.wait [#allocation4], 384  }
 0x21b   :  { %570 = vsyncadd [#allocation4], 4294966912 }
 0x21c   :  { %295 = vsyncpa [#allocation3], 1 }
 0x21d   :  { %296 = vsyncpa [#allocation6], 1 }
 0x21e   :  { %297 = vsyncpa [#allocation4], 1 }

</bundles_post_ra>
